<compile_context>
chip_gen: v6e
topology: v6e:2x2x1
jax: 0.10.0
libtpu: 0.0.40
codegen_flags: <defaults>
</compile_context>

<pallas_src>
import functools

import jax
import jax.numpy as jnp
from jax.experimental import pallas as pl
from jax.experimental.pallas import tpu as pltpu

LANE = 128


def _round_up(x, m):
    return ((x + m - 1) // m) * m


def _sage_layer_kernel(a_ref, xn_ref, xs_ref, w_ref, b_ref, out_ref, acc_ref,
                       *, apply_relu):
    """One SAGEConv('mean') layer over a (row-tile i, contraction-tile k) grid.

    a_ref  : [tm, tk]      bf16 row-normalized adjacency tile (rows i, cols k)
    xn_ref : [tk, F]       bf16 neighbor-feature rows (block k)
    xs_ref : [tm, F]       bf16 self-feature rows (block i, resident across k)
    w_ref  : [2F, H]       bf16 fused [W_self ; W_neigh]   (resident)
    b_ref  : [1, H]        f32 bias                         (resident)
    out_ref: [tm, H]       output rows (block i)
    acc_ref: [tm, F]       f32 scratch accumulator for the mean aggregation
    """
    k = pl.program_id(1)

    @pl.when(k == 0)
    def _():
        acc_ref[...] = jnp.zeros_like(acc_ref)

    # Partial mean aggregation: (row-normalized A) @ X, accumulated over k.
    acc_ref[...] += jnp.dot(a_ref[...], xn_ref[...],
                            preferred_element_type=jnp.float32)

    @pl.when(k == pl.num_programs(1) - 1)
    def _():
        # Fused self/neighbor projection: [x | h_neigh] @ [W_self ; W_neigh] + b
        cat = jnp.concatenate(
            [xs_ref[...], acc_ref[...].astype(jnp.bfloat16)], axis=-1)
        h = jnp.dot(cat, w_ref[...], preferred_element_type=jnp.float32)
        h = h + b_ref[...]
        if apply_relu:
            h = jnp.maximum(h, 0.0)
        out_ref[...] = h.astype(out_ref.dtype)


def _sage_layer(a, x, w_cat, b, *, apply_relu, out_dtype, tm, tk):
    """a:[N,N] bf16 (row-normalized), x:[N,F] bf16, w_cat:[2F,H] bf16, b:[1,H] f32."""
    n = a.shape[0]
    feat = x.shape[1]
    hdim = w_cat.shape[1]
    assert w_cat.shape[0] == 2 * feat
    assert n % tm == 0 and n % tk == 0

    grid = (n // tm, n // tk)
    flops = int(2 * n * n * feat + 2 * n * (2 * feat) * hdim)
    bytes_accessed = int(a.size * 2                       # adjacency, read once
                         + x.size * 2 * (grid[0] + 1)     # neighbor + self rows
                         + w_cat.size * 2 + b.size * 4
                         + n * hdim * jnp.dtype(out_dtype).itemsize)

    kernel = functools.partial(_sage_layer_kernel, apply_relu=apply_relu)
    return pl.pallas_call(
        kernel,
        out_shape=jax.ShapeDtypeStruct((n, hdim), out_dtype),
        grid_spec=pltpu.PrefetchScalarGridSpec(
            num_scalar_prefetch=0,
            grid=grid,
            in_specs=[
                pl.BlockSpec((tm, tk), lambda i, k: (i, k)),        # A tile
                pl.BlockSpec((tk, feat), lambda i, k: (k, 0)),      # X rows (agg)
                pl.BlockSpec((tm, feat), lambda i, k: (i, 0)),      # X rows (self)
                pl.BlockSpec((2 * feat, hdim), lambda i, k: (0, 0)),  # weights
                pl.BlockSpec((1, hdim), lambda i, k: (0, 0)),       # bias
            ],
            out_specs=pl.BlockSpec((tm, hdim), lambda i, k: (i, 0)),
            scratch_shapes=[pltpu.VMEM((tm, feat), jnp.float32)],
        ),
        compiler_params=pltpu.CompilerParams(
            dimension_semantics=("parallel", "arbitrary"),
            vmem_limit_bytes=64 * 1024 * 1024,
        ),
        cost_estimate=pl.CostEstimate(
            flops=flops, transcendentals=0, bytes_accessed=bytes_accessed),
    )(a, x, x, w_cat, b)


def graphsage_forward(a_mean, x, params, *, tile_m=128, tile_k=128):
    """Two SAGEConv('mean') layers with ReLU in between.

    a_mean: [N, N] f32 row-normalized adjacency (row i = mean over neighbors of i).
    x:      [N, in_feats] f32 node features.
    """
    n, in_f = x.shape
    hid = params["w1_self"].shape[1]
    out_f = params["w2_self"].shape[1]

    # ---- pad to TPU-friendly shapes (lane-dense, tile-divisible) ------------
    n_pad = _round_up(n, max(tile_m, tile_k))
    f_pad = _round_up(in_f, LANE)
    h_pad = _round_up(hid, LANE)
    o_pad = _round_up(out_f, LANE)

    a_p = jnp.zeros((n_pad, n_pad), jnp.bfloat16).at[:n, :n].set(
        a_mean.astype(jnp.bfloat16))
    x_p = jnp.zeros((n_pad, f_pad), jnp.bfloat16).at[:n, :in_f].set(
        x.astype(jnp.bfloat16))

    def pad_w(w, r, c):
        return jnp.zeros((r, c), jnp.bfloat16).at[:w.shape[0], :w.shape[1]].set(
            w.astype(jnp.bfloat16))

    w1 = jnp.concatenate([pad_w(params["w1_self"], f_pad, h_pad),
                          pad_w(params["w1_neigh"], f_pad, h_pad)], axis=0)
    w2 = jnp.concatenate([pad_w(params["w2_self"], h_pad, o_pad),
                          pad_w(params["w2_neigh"], h_pad, o_pad)], axis=0)
    b1 = jnp.zeros((1, h_pad), jnp.float32).at[:, :hid].set(
        params["b1"].reshape(1, -1).astype(jnp.float32))
    b2 = jnp.zeros((1, o_pad), jnp.float32).at[:, :out_f].set(
        params["b2"].reshape(1, -1).astype(jnp.float32))

    # Layer 1 (+ReLU) and layer 2 are separate pallas_calls: layer-2's
    # aggregation A @ h1 needs h1 rows from every row tile.
    h1 = _sage_layer(a_p, x_p, w1, b1, apply_relu=True,
                     out_dtype=jnp.bfloat16, tm=tile_m, tk=tile_k)
    out = _sage_layer(a_p, h1, w2, b2, apply_relu=False,
                      out_dtype=jnp.float32, tm=tile_m, tk=tile_k)
    return out[:n, :out_f]


def _reference(a_mean, x, p):
    h_n1 = a_mean @ x
    h1 = jnp.maximum(x @ p["w1_self"] + h_n1 @ p["w1_neigh"] + p["b1"], 0.0)
    h_n2 = a_mean @ h1
    return h1 @ p["w2_self"] + h_n2 @ p["w2_neigh"] + p["b2"]


def build_mean_adjacency(n_nodes, edges):
    """Dense row-normalized adjacency: row i = mean over neighbors of i."""
    e = jnp.asarray(edges, jnp.int32)
    src = jnp.concatenate([e[:, 0], e[:, 1]])
    dst = jnp.concatenate([e[:, 1], e[:, 0]])
    a = jnp.zeros((n_nodes, n_nodes), jnp.float32).at[src, dst].set(1.0)
    deg = jnp.sum(a, axis=1, keepdims=True)
    return jnp.where(deg > 0, a / jnp.maximum(deg, 1.0), 0.0)


if __name__ == "__main__":
    # Small deterministic problem: 300 nodes (padded to 384 -> 3x3 grid of
    # 128-tiles), in=16, hidden=32, out=16 (feature dims padded to 128 lanes).
    N, IN_FEATS, HIDDEN, OUT_FEATS = 300, 16, 32, 16

    key = jax.random.PRNGKey(0)
    k_x, k1s, k1n, kb1, k2s, k2n, kb2 = jax.random.split(key, 7)

    x = jax.random.normal(k_x, (N, IN_FEATS), jnp.float32)

    # Deterministic synthetic graph: ring + two chords.
    edges = [(i, (i + 1) % N) for i in range(N)] + [(0, N // 2), (3, N // 3)]
    a_mean = build_mean_adjacency(N, edges)

    params = {
        "w1_self":  jax.random.normal(k1s, (IN_FEATS, HIDDEN), jnp.float32) * 0.1,
        "w1_neigh": jax.random.normal(k1n, (IN_FEATS, HIDDEN), jnp.float32) * 0.1,
        "b1":       jax.random.normal(kb1, (1, HIDDEN), jnp.float32) * 0.1,
        "w2_self":  jax.random.normal(k2s, (HIDDEN, OUT_FEATS), jnp.float32) * 0.1,
        "w2_neigh": jax.random.normal(k2n, (HIDDEN, OUT_FEATS), jnp.float32) * 0.1,
        "b2":       jax.random.normal(kb2, (1, OUT_FEATS), jnp.float32) * 0.1,
    }

    out = graphsage_forward(a_mean, x, params, tile_m=128, tile_k=128)
    out = jax.block_until_ready(out)

    ref = _reference(a_mean, x, params)
    assert out.shape == (N, OUT_FEATS)
    # bf16 activations/weights with f32 accumulation -> looser tolerance.
    assert jnp.allclose(out, ref, atol=3e-2, rtol=3e-2), (
        f"max abs err = {jnp.max(jnp.abs(out - ref))}")

    print("KERNEL_OK")
</pallas_src>

<mosaic_0001>
module attributes {stable_mosaic.version = 11 : i64} {
  func.func @_sage_layer_kernel(%arg0: i32, %arg1: i32, %arg2: memref<128x128xbf16, #tpu.memory_space<vmem>>, %arg3: memref<128x128xbf16, #tpu.memory_space<vmem>>, %arg4: memref<128x128xbf16, #tpu.memory_space<vmem>>, %arg5: memref<256x128xbf16, #tpu.memory_space<vmem>>, %arg6: memref<1x128xf32, #tpu.memory_space<vmem>>, %arg7: memref<128x128xbf16, #tpu.memory_space<vmem>>, %arg8: memref<128x128xf32, #tpu.memory_space<vmem>>) attributes {dimension_semantics = [#tpu.dimension_semantics<parallel>, #tpu.dimension_semantics<arbitrary>], iteration_bounds = array<i64: 3, 3>, scalar_prefetch = 0 : i64, scratch_operands = 1 : i64, tpu.core_type = #tpu.core_type<tc>, window_params = [{transform_indices = @transform_0, window_bounds = array<i64: 128, 128>}, {transform_indices = @transform_1, window_bounds = array<i64: 128, 128>}, {transform_indices = @transform_2, window_bounds = array<i64: 128, 128>}, {pipeline_mode = #tpu.pipeline_mode<synchronous>, transform_indices = @transform_3, window_bounds = array<i64: 256, 128>}, {pipeline_mode = #tpu.pipeline_mode<synchronous>, transform_indices = @transform_4, window_bounds = array<i64: 1, 128>}, {transform_indices = @transform_5, window_bounds = array<i64: 128, 128>}]} {
    %c0_i32 = arith.constant 0 : i32
    %0 = arith.cmpi eq, %arg1, %c0_i32 : i32
    %1 = arith.extui %0 : i1 to i32
    %c0_i32_0 = arith.constant 0 : i32
    %2 = arith.cmpi ne, %1, %c0_i32_0 : i32
    scf.if %2 {
      %cst_9 = arith.constant 0.000000e+00 : f32
      %12 = vector.broadcast %cst_9 : f32 to vector<128x128xf32>
      %c0_10 = arith.constant 0 : index
      %c0_11 = arith.constant 0 : index
      %13 = vector.load %arg8[%c0_10, %c0_11] : memref<128x128xf32, #tpu.memory_space<vmem>>, vector<128x128xf32>
      tpu.vector_store %arg8[%c0_10, %c0_11], %12 {strides = array<i32>} : memref<128x128xf32, #tpu.memory_space<vmem>>, vector<128x128xf32>,
    } else {
    }
    %c0 = arith.constant 0 : index
    %c0_1 = arith.constant 0 : index
    %3 = vector.load %arg8[%c0, %c0_1] : memref<128x128xf32, #tpu.memory_space<vmem>>, vector<128x128xf32>
    %c0_2 = arith.constant 0 : index
    %c0_3 = arith.constant 0 : index
    %4 = vector.load %arg2[%c0_2, %c0_3] : memref<128x128xbf16, #tpu.memory_space<vmem>>, vector<128x128xbf16>
    %c0_4 = arith.constant 0 : index
    %c0_5 = arith.constant 0 : index
    %5 = vector.load %arg3[%c0_4, %c0_5] : memref<128x128xbf16, #tpu.memory_space<vmem>>, vector<128x128xbf16>
    %cst = arith.constant dense<0.000000e+00> : vector<128x128xf32>
    %6 = tpu.matmul %4, %5, %cst {dimension_numbers = #tpu.dot_dimension_numbers<[1], [0], [0], [1], [0, 0, 1, 1], [], []>} : vector<128x128xbf16>, vector<128x128xbf16>, vector<128x128xf32> -> vector<128x128xf32>
    %7 = arith.addf %3, %6 : vector<128x128xf32>
    %c0_6 = arith.constant 0 : index
    %c0_7 = arith.constant 0 : index
    %8 = vector.load %arg8[%c0_6, %c0_7] : memref<128x128xf32, #tpu.memory_space<vmem>>, vector<128x128xf32>
    tpu.vector_store %arg8[%c0_6, %c0_7], %7 {strides = array<i32>} : memref<128x128xf32, #tpu.memory_space<vmem>>, vector<128x128xf32>,
    %c2_i32 = arith.constant 2 : i32
    %9 = arith.cmpi eq, %arg1, %c2_i32 : i32
    %10 = arith.extui %9 : i1 to i32
    %c0_i32_8 = arith.constant 0 : i32
    %11 = arith.cmpi ne, %10, %c0_i32_8 : i32
    scf.if %11 {
      %c0_9 = arith.constant 0 : index
      %c0_10 = arith.constant 0 : index
      %12 = vector.load %arg4[%c0_9, %c0_10] : memref<128x128xbf16, #tpu.memory_space<vmem>>, vector<128x128xbf16>
      %c0_11 = arith.constant 0 : index
      %c0_12 = arith.constant 0 : index
      %13 = vector.load %arg8[%c0_11, %c0_12] : memref<128x128xf32, #tpu.memory_space<vmem>>, vector<128x128xf32>
      %14 = arith.truncf %13 : vector<128x128xf32> to vector<128x128xbf16>
      %15 = tpu.concatenate %12, %14 in 1 : vector<128x128xbf16>, vector<128x128xbf16> -> vector<128x256xbf16>
      %c0_13 = arith.constant 0 : index
      %c0_14 = arith.constant 0 : index
      %16 = vector.load %arg5[%c0_13, %c0_14] : memref<256x128xbf16, #tpu.memory_space<vmem>>, vector<256x128xbf16>
      %cst_15 = arith.constant dense<0.000000e+00> : vector<128x128xf32>
      %17 = tpu.matmul %15, %16, %cst_15 {dimension_numbers = #tpu.dot_dimension_numbers<[1], [0], [0], [1], [0, 0, 1, 1], [], []>} : vector<128x256xbf16>, vector<256x128xbf16>, vector<128x128xf32> -> vector<128x128xf32>
      %c0_16 = arith.constant 0 : index
      %c0_17 = arith.constant 0 : index
      %18 = vector.load %arg6[%c0_16, %c0_17] : memref<1x128xf32, #tpu.memory_space<vmem>>, vector<1x128xf32>
      %19 = vector.broadcast %18 : vector<1x128xf32> to vector<128x128xf32>
      %20 = arith.addf %17, %19 : vector<128x128xf32>
      %cst_18 = arith.constant 0.000000e+00 : f32
      %21 = vector.broadcast %cst_18 : f32 to vector<128x128xf32>
      %22 = arith.maximumf %20, %21 : vector<128x128xf32>
      %23 = arith.truncf %22 : vector<128x128xf32> to vector<128x128xbf16>
      %c0_19 = arith.constant 0 : index
      %c0_20 = arith.constant 0 : index
      %24 = vector.load %arg7[%c0_19, %c0_20] : memref<128x128xbf16, #tpu.memory_space<vmem>>, vector<128x128xbf16>
      tpu.vector_store %arg7[%c0_19, %c0_20], %23 {strides = array<i32>} : memref<128x128xbf16, #tpu.memory_space<vmem>>, vector<128x128xbf16>,
    } else {
    }
    return
  }
  func.func @transform_0(%arg0: i32, %arg1: i32) -> (i32, i32) {
    %c0_i32 = arith.constant 0 : i32
    return %arg0, %arg1 : i32, i32
  }
  func.func @transform_1(%arg0: i32, %arg1: i32) -> (i32, i32) {
    %c0_i32 = arith.constant 0 : i32
    %c0_i32_0 = arith.constant 0 : i32
    return %arg1, %c0_i32 : i32, i32
  }
  func.func @transform_2(%arg0: i32, %arg1: i32) -> (i32, i32) {
    %c0_i32 = arith.constant 0 : i32
    %c0_i32_0 = arith.constant 0 : i32
    return %arg0, %c0_i32 : i32, i32
  }
  func.func @transform_3(%arg0: i32, %arg1: i32) -> (i32, i32) {
    %c0_i32 = arith.constant 0 : i32
    %c0_i32_0 = arith.constant 0 : i32
    %c0_i32_1 = arith.constant 0 : i32
    return %c0_i32, %c0_i32_0 : i32, i32
  }
  func.func @transform_4(%arg0: i32, %arg1: i32) -> (i32, i32) {
    %c0_i32 = arith.constant 0 : i32
    %c0_i32_0 = arith.constant 0 : i32
    %c0_i32_1 = arith.constant 0 : i32
    return %c0_i32, %c0_i32_0 : i32, i32
  }
  func.func @transform_5(%arg0: i32, %arg1: i32) -> (i32, i32) {
    %c0_i32 = arith.constant 0 : i32
    %c0_i32_0 = arith.constant 0 : i32
    return %arg0, %c0_i32 : i32, i32
  }
}

</mosaic_0001>

<bundles_post_ra>
// kernel: tpu_custom_call.1
= control target key start
LH: loop header
LB: loop body
LE: loop exit
PB: predicated region body
PF: predicated region fallthrough
CT: control target
= control target key end

     0   :  { %s2439_s0 = inlined_call_operand.hbm [shape: bf16[384,384], index: 0, kind: input, shape index: {}]   ;;  %s2440_s1 = inlined_call_operand.hbm [shape: bf16[384,128], index: 1, kind: input, shape index: {}]   ;;  %s2441_s2 = inlined_call_operand.hbm [shape: bf16[384,128], index: 2, kind: input, shape index: {}]   ;;  %s2442_s3 = inlined_call_operand.hbm [shape: bf16[256,128], index: 3, kind: input, shape index: {}]   ;;  %s2443_s4 = inlined_call_operand.vmem [shape: f32[1,128], index: 4, kind: input, shape index: {}]   ;;  %s2444_s5 = inlined_call_operand.hbm [shape: bf16[384,128], index: 5, kind: output, shape index: {}]  }
   0x1   :  { %2461 = sst [smem:[#allocation25_spill]] %s2439_s0 }
   0x2   :  { %2462 = sst [smem:[#allocation26_spill]] %s2440_s1 }
   0x3   :  { %2463 = sst [smem:[#allocation27_spill]] %s2442_s3 }
   0x4   :  { %2464 = sst [smem:[#allocation28_spill]] %s2443_s4 }
   0x5   :  { %2465 = sst [smem:[#allocation29_spill]] %s2444_s5 }
   0x6   :  { %10 = vsyncpa [#allocation4], 0 }
   0x7   :  { %12 = vsyncpa [#allocation4 + $0x1], 0 }
   0x8   :  { %13 = vsyncpa [#allocation7], 0 }
   0x9   :  { %15 = vsyncpa [#allocation7 + $0x1], 0 }
   0xa   :  { %16 = vsyncpa [#allocation10], 0 }
   0xb   :  { %17 = vsyncpa [#allocation5], 0 }
   0xc   :  { %19 = vsyncpa [#allocation5 + $0x1], 0  ;;  %s2020_s18 = smov 0   ;;  %s2022_s19 = smov 0  }
   0xd   :  { %s2024_s20 = smov 0   ;;  %s2026_s21 = smov 0  }
   0xe   :  { %s2028_s22 = smov 0   ;;  %s2030_s23 = smov 0  }
   0xf   :  { %s2032_s24 = smov 0   ;;  %s2034_s25 = smov 0  }
  0x10   :  { %s2036_s26 = smov 0   ;;  %s2038_s27 = smov 0  }
  0x11   :  { %s2040_s28 = smov 0   ;;  %s2042_s29 = smov 0  }
  0x12   :  { %s2044_s30 = smov 0   ;;  %s2046_s6 = smov 0  }
  0x13 LB: > { %2466 = sst [smem:[#allocation17_spill]] %s1945_s23  ;;  %s34_s7 = sadd.s32 1, %s1969_s29  ;;  %s1977_s6 = sphi %s2046_s6, %s25_s6   ;;  %s1973_s30 = sphi %s2044_s30, %s2512_s30   ;;  %s1969_s29 = sphi %s2042_s29, %s2523_s29   ;;  %s1965_s28 = sphi %s2040_s28, %s2522_s28   ;;  %s1961_s27 = sphi %s2038_s27, %s2521_s27   ;;  %s1957_s26 = sphi %s2036_s26, %s2520_s26   ;;  %s1953_s25 = sphi %s2034_s25, %s2519_s25   ;;  %s1949_s24 = sphi %s2032_s24, %s2518_s24   ;;  %s1945_s23 = sphi %s2030_s23, %s2509_s23   ;;  %s1941_s22 = sphi %s2028_s22, %s2517_s22   ;;  %s1937_s21 = sphi %s2026_s21, %s2516_s21   ;;  %s1933_s20 = sphi %s2024_s20, %s2515_s20   ;;  %s1929_s19 = sphi %s2022_s19, %s2514_s19   ;;  %s1925_s18 = sphi %s2020_s18, %s2513_s18  }
  0x14   : > { %2467 = sst [smem:[#allocation18_spill]] %s1961_s27  ;;  %s37_s8 = sadd.s32 1, %s1973_s30 }
  0x15   : > { %2468 = sst [smem:[#allocation19_spill]] %s1965_s28  ;;  %p35_p0 = scmp.ge.s32.totalorder %s34_s7, 3 }
  0x16   : > { %2469 = sst [smem:[#allocation20_spill]] %s1973_s30  ;;  %p2449_p1 = scmp.eq.s32.totalorder %s1977_s6, 0 }
  0x17   : > { %s72_s9 = sadd.s32 1, %s1945_s23  ;;  %p79_p2 = scmp.ne.s32.totalorder %s1945_s23, %s1941_s22 }
  0x18   : > { %s2525_s7 = smov (%p35_p0, %s34_s7), 0  ;;  %s2527_s8 = smov (!%p35_p0, %s37_s8), %s1973_s30 }
  0x19   : > { %2470 = sst [smem:[#allocation21_spill]] %s2525_s7  ;;  %s42_s10 = ssub.s32 %s1969_s29, %s2525_s7 }
  0x1a   : > { %p2103_p3 = por %p79_p2, %p2449_p1  ;;  %p39_p4 = scmp.ge.s32.totalorder %s2527_s8, 3 }
  0x1b   : > { %p70_p5 = scmp.eq.s32.totalorder %s42_s10, 0  ;;  %p85_p6 = scmp.ne.s32.totalorder %s1941_s22, %s1937_s21 }
  0x1c   : > { %s2529_s8 = smov (%p39_p4, %s2527_s8), 0  ;;  %p2448_p9 = scmp.lt.s32.totalorder %s1977_s6, 9 }
  0x1d   : > { %2472 = sst [smem:[#allocation22_spill]] %s2529_s8  ;;  %s2116_s13 = ssub.s32 %s1973_s30, %s2529_s8 }
  0x1e   : > { %s2112_s12 = scalar_select %p70_p5, %s1945_s23, %s72_s9  }
  0x1f   : > { %s43_s14 = sor.u32 %s42_s10, %s2116_s13  ;;  %s242_s16 = sand.u32 1, %s1977_s6  }
  0x20   : > { %2473 = sst [smem:[#allocation23_spill]] %s2112_s12  ;;  %p2120_p8 = scmp.eq.s32.totalorder %s43_s14, 0 }
  0x21   : > { %s244_s17 = sand.u32 1, %s1945_s23   ;;  %s1307_s5 = sshll.u32 %s1969_s29, 10 }
  0x22   : > { %s1231_s7 = sshll.u32 %s244_s17, 6  ;;  %s2475_s1 = sld [smem:[#allocation26_spill]] }
  0x23   : > { %s246_s12 = scalar_lea.vmem [#allocation6], %s1231_s7  ;;  %p2135_p10 = pnand %p2448_p9, %p2103_p3 }
  0x24   : > { %s253_s8 = sshll.u32 %s246_s12, 4  ;;  %s2139_s14 = scalar_lea.sflag [#allocation7], %s242_s16  ;;  %s254_s8 = int_to_ptr.vmem [resolvable:$true] %s253_s8 }
  0x25   : > { %p1713_p11 = pneg %p2135_p10  ;;  %s1724_s17 = scalar_lea.vmem %s254_s8, 1024 }
  0x26   : > { %p1725_p12 = scmp.ne.s32.totalorder %s254_s8, %s1724_s17  ;;  %s1979_s4 = smov [#allocation6]  }
  0x28   : > { %s252_s9 = scalar_lea.hbm %s2475_s1, %s1307_s5  ;;  %p1727_p13 = pnand %p1725_p12, %p1713_p11 }
  0x29   : > { %s1729_s5 = sshll.u32 %s1979_s4, 4  ;;  %s1730_s5 = int_to_ptr.vmem [resolvable:$false] %s1729_s5 }
  0x2a   : > { %p1728_p0 = pneg %p1727_p13  ;;  %s1731_s28 = scalar_lea.vmem %s1730_s5, 2048 }
  0x2b   : > { %p1732_p2 = scmp.lt.s32.totalorder %s254_s8, %s1730_s5  ;;  %p1733_p4 = scmp.lt.s32.totalorder %s1731_s28, %s1724_s17 }
  0x2d   : > { %p1734_p3 = por %p1733_p4, %p1732_p2 }
  0x2f   : > { %p1735_p5 = pnand %p1734_p3, %p1728_p0 }
  0x31   : > { %1738 = shalt.err (!%p1735_p5)
}
  0x32   : > { %s2454_s7 = smov 64   ;;  %s2456_s11 = smov 4  }
  0x33   : > { %1540 = dma.hbm_to_vmem [thread:$0]  (!%p2135_p10), %s252_s9, 1024, %s254_s8, %s2139_s14, %s2454_s7, %s2454_s7, %s2456_s11  }
  0x34   : > { %s2150_s12 = sadd.s32 4294967295, %s1977_s6   ;;  %p1224_p11 = scmp.ge.s32.totalorder %s1977_s6, 1 }
  0x35   : > { %p2459_p12 = scmp.eq.s32.totalorder %s2150_s12, 0  ;;  %p190_p0 = scmp.lt.s32.totalorder %s1977_s6, 10 }
  0x36   : > { %s1982_s8 = smov [#allocation9]   ;;  %s46_s17 = sadd.s32 1, %s1957_s26 }
  0x37   : > { %p2161_p2 = por %p85_p6, %p2459_p12  ;;  %p2165_p4 = pnand %p1224_p11, %p190_p0 }
  0x38   : > { %s202_s9 = sshll.u32 %s1982_s8, 4  ;;  %p53_p5 = scmp.ne.s32.totalorder %s1957_s26, %s1953_s25  ;;  %s203_s9 = int_to_ptr.vmem [resolvable:$true] %s202_s9 }
  0x39   : > { %s2477_s16 = scalar_select %p2161_p2, 1, 0 }
  0x3a   : > { %p1530_p10 = pneg %p2165_p4  ;;  %s1750_s21 = scalar_lea.vmem %s203_s9, 2048 }
  0x3b   : > { %2478 = sst [smem:[#allocation24_spill]] %s2477_s16  ;;  %p1751_p6 = scmp.ne.s32.totalorder %s203_s9, %s1750_s21 }
  0x3c   : > { %p1531_p3 = pnand %p1530_p10, %p2459_p12  ;;  %p1758_p1 = scmp.lt.s32.totalorder %s203_s9, %s203_s9 }
  0x3d   : > { %p1759_p11 = scmp.lt.s32.totalorder %s1750_s21, %s1750_s21 }
  0x3e   : > { %p1741_p13 = pneg %p1531_p3 }
  0x3f   : > { %p1760_p0 = por %p1759_p11, %p1758_p1 }
  0x40   : > { %p1753_p7 = pnand %p1751_p6, %p1741_p13 }
  0x42   : > { %p1754_p9 = pneg %p1753_p7 }
  0x44   : > { %p1761_p2 = pnand %p1760_p0, %p1754_p9 }
  0x46   : > { %1764 = shalt.err (!%p1761_p2)
}
  0x47   : > { %s2480_s3 = sld [smem:[#allocation27_spill]]  ;;  %p2481_p1 = scmp.eq.s32.totalorder %s1977_s6, 0 }
  0x48   : > { %s2185_s28 = scalar_select %p2120_p8, %s1957_s26, %s46_s17  }
  0x49   : > { %p55_p7 = por %p2481_p1, %p53_p5  ;;  %p59_p9 = scmp.ne.s32.totalorder %s1953_s25, %s1949_s24 }
  0x4a   : > { %s219_s8 = sand.u32 1, %s1957_s26   ;;  %s1517_s21 = smul.u32 48, %s1973_s30 }
  0x4b   : > { %p2198_p13 = por %p2459_p12, %p59_p9  ;;  %s1227_s5 = sshll.u32 %s219_s8, 6 }
  0x4c   : > { %s229_s1 = sadd.s32 %s1969_s29, %s1517_s21  ;;  %s2483_s0 = sld [smem:[#allocation25_spill]] }
  0x4d   : > { %1533 = dma.hbm_to_vmem [thread:$0]  (!%p1531_p3), %s2480_s3, 2048, %s203_s9, [#allocation10], %s2454_s7, %s2454_s7, %s2456_s11  }
  0x4e   : > { %s1230_s23 = sshll.u32 %s229_s1, 6  ;;  %s223_s9 = scalar_lea.vmem [#allocation3], %s1227_s5 }
  0x4f   : > { %s232_s17 = sshll.u32 %s223_s9, 4  ;;  %p2484_p8 = scmp.lt.s32.totalorder %s1977_s6, 9  ;;  %s233_s17 = int_to_ptr.vmem [resolvable:$true] %s232_s17 }
  0x50   : > { %s220_s7 = scalar_lea.sflag [#allocation4], %s219_s8  ;;  %s1778_s11 = scalar_lea.vmem %s233_s17, 1024 }
  0x51   : > { %p2208_p2 = pnand %p2484_p8, %p55_p7  ;;  %p1779_p3 = scmp.ne.s32.totalorder %s233_s17, %s1778_s11 }
  0x52   : > { %s231_s15 = scalar_lea.hbm %s2483_s0, %s1230_s23  ;;  %s1983_s1 = smov [#allocation3]  }
  0x53   : > { %p1767_p10 = pneg %p2208_p2  ;;  %s1783_s21 = sshll.u32 %s1983_s1, 4  ;;  %s1784_s21 = int_to_ptr.vmem [resolvable:$false] %s1783_s21 }
  0x54   : > { %s1785_s23 = scalar_lea.vmem %s1784_s21, 2048  ;;  %p1786_p11 = scmp.lt.s32.totalorder %s233_s17, %s1784_s21 }
  0x55   : > { %p1781_p5 = pnand %p1779_p3, %p1767_p10  ;;  %p1787_p0 = scmp.lt.s32.totalorder %s1785_s23, %s1778_s11 }
  0x57   : > { %p1782_p6 = pneg %p1781_p5  ;;  %p1788_p1 = por %p1787_p0, %p1786_p11 }
  0x59   : > { %p1789_p9 = pnand %p1788_p1, %p1782_p6 }
  0x5b   : > { %1792 = shalt.err (!%p1789_p9)
}
  0x5c   : > { %s1984_s27 = smov 192   ;;  %s2486_s16 = smov 4  }
  0x5d   : > { %s2487_s8 = smov 64   ;;  %s1223_s11 = sadd.s32 4294967294, %s1977_s6  }
  0x5e   : > { %1537 = dma.hbm_to_vmem [thread:$0]  (!%p2208_p2), %s231_s15, 1024, %s233_s17, %s220_s7, %s1984_s27, %s2487_s8, %s2486_s16  }
  0x5f   : > { %s98_s5 = sadd.s32 1, %s1933_s20  ;;  %p2488_p7 = scmp.eq.s32.totalorder %s2116_s13, 0 }
  0x60   : > { %p105_p8 = scmp.ne.s32.totalorder %s1933_s20, %s1929_s19  ;;  %p111_p10 = scmp.ne.s32.totalorder %s1929_s19, %s1925_s18 }
  0x61   : > { %s2223_s9 = scalar_select %p2488_p7, %s1933_s20, %s98_s5  }
  0x62   : > { %p183_p3 = scmp.eq.s32.totalorder %s1223_s11, 8  ;;  %s265_s24 = sand.u32 1, %s1933_s20  }
  0x63   : > { %p2489_p5 = scmp.eq.s32.totalorder %s1977_s6, 0  ;;  %p2234_p11 = por %p111_p10, %p2459_p12 }
  0x64   : > { %p2491_p0 = scmp.eq.s32.totalorder %s2150_s12, 8  ;;  %p2244_p2 = por %p183_p3, %p111_p10 }
  0x65   : > { %p107_p6 = por %p105_p8, %p2489_p5  ;;  %s1234_s15 = sshll.u32 %s265_s24, 6 }
  0x66   : > { %p2240_p1 = por %p2491_p0, %p105_p8  ;;  %s1308_s17 = sshll.u32 %s1973_s30, 10 }
  0x67   : > { %s2493_s13 = scalar_select %p2244_p2, 1, 0 }
  0x68   : > { %s2492_s7 = scalar_select %p2240_p1, 1, 0 }
  0x69   : > { %s273_s27 = scalar_lea.hbm %s2441_s2, %s1308_s17  ;;  %s267_s11 = scalar_lea.vmem [#allocation8], %s1234_s15 }
  0x6a   : > { %s274_s5 = sshll.u32 %s267_s11, 4  ;;  %p2494_p9 = scmp.lt.s32.totalorder %s1977_s6, 9  ;;  %s275_s5 = int_to_ptr.vmem [resolvable:$true] %s274_s5 }
  0x6b   : > { %s1806_s3 = scalar_lea.vmem %s275_s5, 1024  ;;  %s1985_s24 = smov [#allocation8]  }
  0x6c   : > { %p2254_p7 = pnand %p2494_p9, %p107_p6  ;;  %p1807_p10 = scmp.ne.s32.totalorder %s275_s5, %s1806_s3 }
  0x6d   : > { %s1811_s30 = sshll.u32 %s1985_s24, 4  ;;  %s1812_s30 = int_to_ptr.vmem [resolvable:$false] %s1811_s30 }
  0x6e   : > { %p1795_p8 = pneg %p2254_p7  ;;  %s1813_s21 = scalar_lea.vmem %s1812_s30, 2048 }
  0x6f   : > { %p1814_p0 = scmp.lt.s32.totalorder %s275_s5, %s1812_s30  ;;  %p1815_p12 = scmp.lt.s32.totalorder %s1813_s21, %s1806_s3 }
  0x70   : > { %p1809_p3 = pnand %p1807_p10, %p1795_p8 }
  0x71   : > { %p1816_p2 = por %p1815_p12, %p1814_p0 }
  0x72   : > { %p1810_p5 = pneg %p1809_p3 }
  0x74   : > { %p1817_p1 = pnand %p1816_p2, %p1810_p5 }
  0x76   : > { %1820 = shalt.err (!%p1817_p1)
}
  0x77   : > { %1543 = dma.hbm_to_vmem [thread:$0]  (!%p2254_p7), %s273_s27, 1024, %s275_s5, %s2139_s14, %s2487_s8, %s2487_s8, %s2486_s16  }
  0x78   : > { %286 = sbr.rel (%p2165_p4) target bundleno = 699 (0x2bb), region = 40  ;;  %s288_s15 = sand.u32 (!%p2165_p4), 1, %s1953_s25  }
  0x79   : > { %s1238_s17 = sshll.u32 (!%p2165_p4), %s288_s15, 6  ;;  %s289_s23 = scalar_lea.sflag (!%p2165_p4), [#allocation4], %s288_s15 }
  0x7a   : > { %s2269_s30 = scalar_lea.vmem (!%p2165_p4), [#allocation3], %s1238_s17 }
  0x7d   : > { %1904 = dma.done.wait (%p2198_p13), %s289_s23, 1024  }
  0x7e   : > { %1906 = vsyncadd (%p2198_p13), %s289_s23, 4294966272  ;;  %s2496_s0 = sld [smem:[#allocation24_spill]]  ;;  %s297_s3 = sand.u32 1, %s2150_s12  }
  0x7f   : > { %s299_s14 = sand.u32 1, %s1941_s22   ;;  %s298_s10 = scalar_lea.sflag [#allocation7], %s297_s3 }
  0x80   : > { %s1239_s16 = sshll.u32 %s299_s14, 6 }
  0x81   : > { %s2277_s8 = scalar_lea.vmem [#allocation6], %s1239_s16 }
  0x84   : > { %p2497_p12 = scmp.ne.s32.totalorder %s2496_s0, 0 }
  0x86   : > { %1908 = dma.done.wait (%p2497_p12), %s298_s10, 1024  }
  0x87   : > { %1910 = vsyncadd (%p2497_p12), %s298_s10, 4294966272  ;;  %s308_s27 = sand.u32 1, %s1929_s19  }
  0x88   : > { %s1240_s4 = sshll.u32 %s308_s27, 6 }
  0x89   : > { %s2286_s11 = scalar_lea.vmem [#allocation8], %s1240_s4 }
  0x8a   : > { %1912 = dma.done.wait (%p2234_p11), %s298_s10, 1024  }
  0x8b   : > { %1914 = vsyncadd (%p2234_p11), %s298_s10, 4294966272  ;;  %p2498_p4 = scmp.eq.s32.totalorder %s2150_s12, 0 }
  0x8d   : > { %1916 = dma.done.wait (%p2498_p4), [#allocation10], 2048   ;;  %p2499_p13 = pmov %p2498_p4 }
  0x8e   : > { %s2296_s5 = scalar_lea.vmem [#allocation11], %s1240_s4  ;;  %s2500_s24 = sld [smem:[#allocation18_spill]] }
  0x8f   : > { %1918 = vsyncadd (%p2499_p13), [#allocation10], 4294965248 }
  0x94   : > { %p1243_p6 = scmp.ne.s32.totalorder %s2500_s24, 0 }
  0x96   : > { %359 = sbr.rel (%p1243_p6) target bundleno = 164 (0xa4), region = 60 }
  0x9b   : > { %v1986_v0 = vmov 0.0  }
  0x9c   : > { %360 = vst [vmem:[#allocation2 + $0x30] sm:$0xff] %v1986_v0  ;;  %361 = vst [vmem:[#allocation2] sm:$0xff] %v1986_v0 }
  0x9d   : > { %362 = vst [vmem:[#allocation2 + $0x58] sm:$0xff] %v1986_v0  ;;  %363 = vst [vmem:[#allocation2 + $0x18] sm:$0xff] %v1986_v0 }
  0x9e   : > { %364 = vst [vmem:[#allocation2 + $0x50] sm:$0xff] %v1986_v0  ;;  %365 = vst [vmem:[#allocation2 + $0x68] sm:$0xff] %v1986_v0 }
  0x9f   : > { %366 = vst [vmem:[#allocation2 + $0x8] sm:$0xff] %v1986_v0  ;;  %367 = vst [vmem:[#allocation2 + $0x48] sm:$0xff] %v1986_v0 }
  0xa0   : > { %368 = vst [vmem:[#allocation2 + $0x40] sm:$0xff] %v1986_v0  ;;  %369 = vst [vmem:[#allocation2 + $0x20] sm:$0xff] %v1986_v0 }
  0xa1   : > { %370 = vst [vmem:[#allocation2 + $0x10] sm:$0xff] %v1986_v0  ;;  %371 = vst [vmem:[#allocation2 + $0x38] sm:$0xff] %v1986_v0 }
  0xa2   : > { %372 = vst [vmem:[#allocation2 + $0x60] sm:$0xff] %v1986_v0  ;;  %373 = vst [vmem:[#allocation2 + $0x70] sm:$0xff] %v1986_v0 }
  0xa3   : > { %374 = vst [vmem:[#allocation2 + $0x78] sm:$0xff] %v1986_v0  ;;  %375 = vst [vmem:[#allocation2 + $0x28] sm:$0xff] %v1986_v0 }
  0xa4 PF: > { %v1671_v1 = vld [vmem:[%s2277_s8 + $0x38] sm:$0xff]   ;;  %v1672_v2 = vld [vmem:[%s2277_s8 + $0x30] sm:$0xff]   ;;  %v1673_v3 = vld [vmem:[%s2277_s8 + $0x28] sm:$0xff]   ;;  %s2501_s12 = sld [smem:[#allocation18_spill]] }
  0xa5   : > { %1453 = vmatprep.subr.bf16.mxu0 %v1671_v1  ;;  %1485 = vmatprep.subr.bf16.mxu1 %v1671_v1  ;;  %v1674_v4 = vld [vmem:[%s2277_s8 + $0x20] sm:$0xff]   ;;  %v1675_v7 = vld [vmem:[%s2277_s8 + $0x18] sm:$0xff]   ;;  %v1676_v8 = vld [vmem:[%s2277_s8 + $0x10] sm:$0xff]  }
  0xa6   : > { %1454 = vmatpush3.bf16.msra.mxu0 %v1671_v1  ;;  %1493 = vmatpush3.bf16.msra.mxu1 %v1671_v1  ;;  %v1679_v5 = vld [vmem:[%s2269_s30] sm:$0xff]   ;;  %v1677_v9 = vld [vmem:[%s2277_s8 + $0x8] sm:$0xff]   ;;  %v1683_v13 = vld [vmem:[%s2269_s30 + $0x10] sm:$0xff]  }
  0xa7   : > { %1455 = vmatprep.subr.bf16.mxu0 %v1672_v2  ;;  %1486 = vmatprep.subr.bf16.mxu1 %v1672_v2  ;;  %v1680_v6 = vld [vmem:[%s2269_s30 + $0x20] sm:$0xff]   ;;  %v1681_v11 = vld [vmem:[%s2269_s30 + $0x8] sm:$0xff]   ;;  %v1684_v14 = vld [vmem:[%s2269_s30 + $0x30] sm:$0xff]  }
  0xa8   : > { %1469 = vmatprep.mubr.bf16.mxu0 %v1679_v5  ;;  %1477 = vmatprep.mubr.bf16.mxu1 %v1680_v6  ;;  %v1678_v10 = vld [vmem:[%s2277_s8] sm:$0xff]   ;;  %v1682_v12 = vld [vmem:[%s2269_s30 + $0x28] sm:$0xff]   ;;  %v1685_v15 = vld [vmem:[%s2269_s30 + $0x18] sm:$0xff]  }
  0xa9   : > { %v1686_v16 = vld [vmem:[%s2269_s30 + $0x38] sm:$0xff]   ;;  %v386_v18 = vld [vmem:[#allocation2 + $0x10] sm:$0xff]  ;;  %v384_v22 = vld [vmem:[#allocation2 + $0x40] sm:$0xff] }
  0xaa   : > { %1456 = vmatpush3.bf16.msra.mxu0 %v1672_v2  ;;  %1494 = vmatpush3.bf16.msra.mxu1 %v1672_v2  ;;  %v378_v17 = vld [vmem:[#allocation2 + $0x58] sm:$0xff]  ;;  %v376_v21 = vld [vmem:[#allocation2 + $0x30] sm:$0xff]  ;;  %v377_v33 = vld [vmem:[#allocation2] sm:$0xff]  ;;  %p1260_p11 = scmp.ne.s32.totalorder %s2501_s12, 2 }
  0xab   : > { %1457 = vmatprep.subr.bf16.mxu0 %v1673_v3  ;;  %1487 = vmatprep.subr.bf16.mxu1 %v1673_v3  ;;  %v379_v27 = vld [vmem:[#allocation2 + $0x18] sm:$0xff]  ;;  %v385_v34 = vld [vmem:[#allocation2 + $0x20] sm:$0xff]  ;;  %v382_v39 = vld [vmem:[#allocation2 + $0x8] sm:$0xff]  ;;  %s2502_s15 = sld [smem:[#allocation28_spill]] (!%p1260_p11) }
  0xac   : > { %v387_v28 = vld [vmem:[#allocation2 + $0x38] sm:$0xff]  ;;  %v380_v45 = vld [vmem:[#allocation2 + $0x50] sm:$0xff]  ;;  %v388_v46 = vld [vmem:[#allocation2 + $0x60] sm:$0xff] }
  0xad   : > { %v390_v40 = vld [vmem:[#allocation2 + $0x78] sm:$0xff]  ;;  %v383_v51 = vld [vmem:[#allocation2 + $0x48] sm:$0xff]  ;;  %v389_v58 = vld [vmem:[#allocation2 + $0x70] sm:$0xff] }
  0xae   : > { %1458 = vmatpush3.bf16.msra.mxu0 %v1673_v3  ;;  %1495 = vmatpush3.bf16.msra.mxu1 %v1673_v3  ;;  %v391_v52 = vld [vmem:[#allocation2 + $0x28] sm:$0xff] }
  0xaf   : > { %1459 = vmatprep.subr.bf16.mxu0 %v1674_v4  ;;  %1488 = vmatprep.subr.bf16.mxu1 %v1674_v4  ;;  %v381_v57 = vld [vmem:[#allocation2 + $0x68] sm:$0xff] }
  0xb2   : > { %1460 = vmatpush3.bf16.msra.mxu0 %v1674_v4  ;;  %1496 = vmatpush3.bf16.msra.mxu1 %v1674_v4 }
  0xb3   : > { %1461 = vmatprep.subr.bf16.mxu0 %v1675_v7  ;;  %1489 = vmatprep.subr.bf16.mxu1 %v1675_v7 }
  0xb6   : > { %1462 = vmatpush3.bf16.msra.mxu0 %v1675_v7  ;;  %1497 = vmatpush3.bf16.msra.mxu1 %v1675_v7 }
  0xb7   : > { %1463 = vmatprep.subr.bf16.mxu0 %v1676_v8  ;;  %1490 = vmatprep.subr.bf16.mxu1 %v1676_v8 }
  0xba   : > { %1464 = vmatpush3.bf16.msra.mxu0 %v1676_v8  ;;  %1498 = vmatpush3.bf16.msra.mxu1 %v1676_v8 }
  0xbb   : > { %1465 = vmatprep.subr.bf16.mxu0 %v1677_v9  ;;  %1491 = vmatprep.subr.bf16.mxu1 %v1677_v9 }
  0xbe   : > { %1466 = vmatpush3.bf16.msra.mxu0 %v1677_v9  ;;  %1499 = vmatpush3.bf16.msra.mxu1 %v1677_v9 }
  0xbf   : > { %1467 = vmatprep.subr.bf16.mxu0 %v1678_v10  ;;  %1492 = vmatprep.subr.bf16.mxu1 %v1678_v10 }
  0xc2   : > { %1468 = vmatpush3.bf16.msra.mxu0 %v1678_v10  ;;  %1500 = vmatpush3.bf16.msra.mxu1 %v1678_v10 }
  0xc5   : > { %1470 = vmatmul.mubr.bf16.vlgmr.msra.gmra.mxu0 %v1681_v11  ;;  %1478 = vmatmul.mubr.bf16.vlgmr.msra.gmra.mxu1 %v1682_v12 }
  0xc6   : > { %1473 = vmatprep.mubr.bf16.mxu0 %v1683_v13  ;;  %1481 = vmatprep.mubr.bf16.mxu1 %v1684_v14 }
  0xcd   : > { %1474 = vmatmul.mubr.bf16.gmra.mxu0 %v1685_v15  ;;  %1482 = vmatmul.mubr.bf16.gmra.mxu1 %v1686_v16 }
 0x185   : > { %v1471_v19 = vpop.f32.mrf.mxu0  ;;  %v1479_v20 = vpop.f32.mrf.mxu1 }
 0x186   : > { %v619_v23 = vadd.f32 %v1471_v19, %v378_v17  ;;  %v627_v24 = vadd.f32 %v1479_v20, %v386_v18 }
 0x187   : > { %v554_v25 = vpop.f32.mrf.mxu0  ;;  %v586_v26 = vpop.f32.mrf.mxu1 }
 0x188   : > { %635 = vst [vmem:[#allocation2 + $0x58] sm:$0xff] %v619_v23  ;;  %643 = vst [vmem:[#allocation2 + $0x10] sm:$0xff] %v627_v24  ;;  %v617_v29 = vadd.f32 %v554_v25, %v376_v21  ;;  %v625_v30 = vadd.f32 %v586_v26, %v384_v22 }
 0x189   : > { %v1472_v31 = vpop.f32.mrf.mxu0  ;;  %v1480_v32 = vpop.f32.mrf.mxu1 }
 0x18a   : > { %633 = vst [vmem:[#allocation2 + $0x30] sm:$0xff] %v617_v29  ;;  %641 = vst [vmem:[#allocation2 + $0x40] sm:$0xff] %v625_v30  ;;  %v620_v35 = vadd.f32 %v1472_v31, %v379_v27  ;;  %v628_v36 = vadd.f32 %v1480_v32, %v387_v28 }
 0x18b   : > { %v557_v37 = vpop.f32.mrf.mxu0  ;;  %v589_v38 = vpop.f32.mrf.mxu1 }
 0x18c   : > { %636 = vst [vmem:[#allocation2 + $0x18] sm:$0xff] %v620_v35  ;;  %644 = vst [vmem:[#allocation2 + $0x38] sm:$0xff] %v628_v36  ;;  %v618_v41 = vadd.f32 %v557_v37, %v377_v33  ;;  %v626_v42 = vadd.f32 %v589_v38, %v385_v34 }
 0x18d   : > { %v1475_v43 = vpop.f32.mrf.mxu0  ;;  %v1483_v44 = vpop.f32.mrf.mxu1 }
 0x18e   : > { %634 = vst [vmem:[#allocation2] sm:$0xff] %v618_v41  ;;  %642 = vst [vmem:[#allocation2 + $0x20] sm:$0xff] %v626_v42  ;;  %v623_v47 = vadd.f32 %v1475_v43, %v382_v39  ;;  %v631_v48 = vadd.f32 %v1483_v44, %v390_v40 }
 0x18f   : > { %v570_v49 = vpop.f32.mrf.mxu0  ;;  %v602_v50 = vpop.f32.mrf.mxu1 }
 0x190   : > { %639 = vst [vmem:[#allocation2 + $0x8] sm:$0xff] %v623_v47  ;;  %647 = vst [vmem:[#allocation2 + $0x78] sm:$0xff] %v631_v48  ;;  %v621_v53 = vadd.f32 %v570_v49, %v380_v45  ;;  %v629_v54 = vadd.f32 %v602_v50, %v388_v46 }
 0x191   : > { %v1476_v55 = vpop.f32.mrf.mxu0  ;;  %v1484_v56 = vpop.f32.mrf.mxu1 }
 0x192   : > { %637 = vst [vmem:[#allocation2 + $0x50] sm:$0xff] %v621_v53  ;;  %645 = vst [vmem:[#allocation2 + $0x60] sm:$0xff] %v629_v54  ;;  %v624_v59 = vadd.f32 %v1476_v55, %v383_v51  ;;  %v632_v60 = vadd.f32 %v1484_v56, %v391_v52  ;;  %652 = sbr.rel (%p1260_p11) target bundleno = 672 (0x2a0), region = 64 }
 0x193   : > { %v573_v61 = vpop.f32.mrf.mxu0  ;;  %v605_v62 = vpop.f32.mrf.mxu1 }
 0x194   : > { %640 = vst [vmem:[#allocation2 + $0x48] sm:$0xff] %v624_v59  ;;  %648 = vst [vmem:[#allocation2 + $0x28] sm:$0xff] %v632_v60  ;;  %v622_v63 = vadd.f32 %v573_v61, %v381_v57  ;;  %v630_v0 = vadd.f32 %v605_v62, %v389_v58 }
 0x196   : > { %638 = vst [vmem:[#allocation2 + $0x68] sm:$0xff] %v622_v63  ;;  %646 = vst [vmem:[#allocation2 + $0x70] sm:$0xff] %v630_v0 }
 0x197   : > { %v1687_v1 = vld [vmem:[#allocation9 + $0x78] sm:$0xff]   ;;  %v1689_v3 = vld [vmem:[#allocation9 + $0x70] sm:$0xff]   ;;  %v1691_v5 = vld [vmem:[#allocation9 + $0x68] sm:$0xff]  }
 0x198   : > { %v1688_v2 = vld [vmem:[#allocation9 + $0x38] sm:$0xff]   ;;  %1389 = vmatprep.subr.bf16.mxu0 %v1687_v1  ;;  %1501 = vmatprep.subr.bf16.mxu1 %v1687_v1  ;;  %v1690_v4 = vld [vmem:[#allocation9 + $0x30] sm:$0xff]   ;;  %v1692_v6 = vld [vmem:[#allocation9 + $0x28] sm:$0xff]  }
 0x199   : > { %1390 = vmatpush3.bf16.msra.mxu0 %v1688_v2  ;;  %1509 = vmatpush3.bf16.msra.mxu1 %v1688_v2  ;;  %v1693_v7 = vld [vmem:[#allocation9 + $0x60] sm:$0xff]   ;;  %v1695_v9 = vld [vmem:[#allocation9 + $0x58] sm:$0xff]   ;;  %v1697_v11 = vld [vmem:[#allocation9 + $0x50] sm:$0xff]  }
 0x19a   : > { %1391 = vmatprep.subr.bf16.mxu0 %v1689_v3  ;;  %1502 = vmatprep.subr.bf16.mxu1 %v1689_v3  ;;  %v1694_v8 = vld [vmem:[#allocation9 + $0x20] sm:$0xff]   ;;  %v1696_v10 = vld [vmem:[#allocation9 + $0x18] sm:$0xff]   ;;  %v669_v12 = vld [vmem:[#allocation2 + $0x30] sm:$0xff] }
 0x19b   : > { %v670_v13 = vld [vmem:[#allocation2] sm:$0xff]  ;;  %v1698_v18 = vld [vmem:[#allocation9 + $0x10] sm:$0xff]   ;;  %v1699_v19 = vld [vmem:[#allocation9 + $0x48] sm:$0xff]  }
 0x19c   : > { %v677_v14 = vld [vmem:[#allocation2 + $0x40] sm:$0xff]  ;;  %v685_v15 = vpack.c.bf16 %v670_v13, %v669_v12  ;;  %v1700_v20 = vld [vmem:[#allocation9 + $0x8] sm:$0xff]   ;;  %v671_v23 = vld [vmem:[#allocation2 + $0x58] sm:$0xff] }
 0x19d   : > { %1392 = vmatpush3.bf16.msra.mxu0 %v1690_v4  ;;  %1510 = vmatpush3.bf16.msra.mxu1 %v1690_v4  ;;  %v678_v16 = vld [vmem:[#allocation2 + $0x20] sm:$0xff]  ;;  %v672_v24 = vld [vmem:[#allocation2 + $0x18] sm:$0xff]  ;;  %v679_v25 = vld [vmem:[#allocation2 + $0x10] sm:$0xff] }
 0x19e   : > { %1393 = vmatprep.subr.bf16.mxu0 %v1691_v5  ;;  %1503 = vmatprep.subr.bf16.mxu1 %v1691_v5  ;;  %v689_v17 = vpack.c.bf16 %v678_v16, %v677_v14  ;;  %v1701_v21 = vld [vmem:[#allocation9 + $0x40] sm:$0xff]   ;;  %v680_v26 = vld [vmem:[#allocation2 + $0x38] sm:$0xff]  ;;  %v686_v29 = vpack.c.bf16 %v672_v24, %v671_v23  ;;  %v673_v31 = vld [vmem:[#allocation2 + $0x50] sm:$0xff] }
 0x19f   : > { %908 = vmatprep.mubr.bf16.mxu0 %v685_v15  ;;  %v1702_v22 = vld [vmem:[#allocation9] sm:$0xff]   ;;  %v690_v30 = vpack.c.bf16 %v680_v26, %v679_v25  ;;  %v674_v32 = vld [vmem:[#allocation2 + $0x68] sm:$0xff]  ;;  %v682_v34 = vld [vmem:[#allocation2 + $0x70] sm:$0xff] }
 0x1a0   : > { %940 = vmatprep.mubr.bf16.mxu1 %v689_v17  ;;  %v1703_v27 = vld [vmem:[%s2286_s11] sm:$0xff]   ;;  %v1705_v35 = vld [vmem:[%s2286_s11 + $0x8] sm:$0xff]   ;;  %v687_v37 = vpack.c.bf16 %v674_v32, %v673_v31  ;;  %v683_v41 = vld [vmem:[#allocation2 + $0x78] sm:$0xff] }
 0x1a1   : > { %1394 = vmatpush3.bf16.msra.mxu0 %v1692_v6  ;;  %1511 = vmatpush3.bf16.msra.mxu1 %v1692_v6  ;;  %v1704_v28 = vld [vmem:[%s2286_s11 + $0x20] sm:$0xff]   ;;  %v1706_v36 = vld [vmem:[%s2286_s11 + $0x28] sm:$0xff]   ;;  %v1707_v43 = vld [vmem:[%s2286_s11 + $0x10] sm:$0xff]  }
 0x1a2   : > { %1395 = vmatprep.subr.bf16.mxu0 %v1693_v7  ;;  %1504 = vmatprep.subr.bf16.mxu1 %v1693_v7  ;;  %v681_v33 = vld [vmem:[#allocation2 + $0x60] sm:$0xff]  ;;  %v675_v39 = vld [vmem:[#allocation2 + $0x8] sm:$0xff]  ;;  %v1708_v44 = vld [vmem:[%s2286_s11 + $0x30] sm:$0xff]  }
 0x1a3   : > { %v691_v38 = vpack.c.bf16 %v682_v34, %v681_v33  ;;  %v676_v40 = vld [vmem:[#allocation2 + $0x48] sm:$0xff]  ;;  %v1709_v47 = vld [vmem:[%s2286_s11 + $0x18] sm:$0xff]   ;;  %v2327_v53 = vld [vmem:[%s2502_s15] ss:$0 sm:$0xff] }
 0x1a4   : > { %v684_v42 = vld [vmem:[#allocation2 + $0x28] sm:$0xff]  ;;  %v688_v45 = vpack.c.bf16 %v676_v40, %v675_v39  ;;  %v1710_v48 = vld [vmem:[%s2286_s11 + $0x38] sm:$0xff]  }
 0x1a5   : > { %1396 = vmatpush3.bf16.msra.mxu0 %v1694_v8  ;;  %1512 = vmatpush3.bf16.msra.mxu1 %v1694_v8  ;;  %v692_v46 = vpack.c.bf16 %v684_v42, %v683_v41 }
 0x1a6   : > { %1397 = vmatprep.subr.bf16.mxu0 %v1695_v9  ;;  %1505 = vmatprep.subr.bf16.mxu1 %v1695_v9 }
 0x1a9   : > { %1398 = vmatpush3.bf16.msra.mxu0 %v1696_v10  ;;  %1513 = vmatpush3.bf16.msra.mxu1 %v1696_v10 }
 0x1aa   : > { %1399 = vmatprep.subr.bf16.mxu0 %v1697_v11  ;;  %1506 = vmatprep.subr.bf16.mxu1 %v1697_v11 }
 0x1ad   : > { %1400 = vmatpush3.bf16.msra.mxu0 %v1698_v18  ;;  %1514 = vmatpush3.bf16.msra.mxu1 %v1698_v18 }
 0x1ae   : > { %1401 = vmatprep.subr.bf16.mxu0 %v1699_v19  ;;  %1507 = vmatprep.subr.bf16.mxu1 %v1699_v19 }
 0x1b1   : > { %1402 = vmatpush3.bf16.msra.mxu0 %v1700_v20  ;;  %1515 = vmatpush3.bf16.msra.mxu1 %v1700_v20 }
 0x1b2   : > { %1403 = vmatprep.subr.bf16.mxu0 %v1701_v21  ;;  %1508 = vmatprep.subr.bf16.mxu1 %v1701_v21 }
 0x1b5   : > { %1404 = vmatpush3.bf16.msra.mxu0 %v1702_v22  ;;  %1516 = vmatpush3.bf16.msra.mxu1 %v1702_v22 }
 0x1b8   : > { %909 = vmatmul.mubr.bf16.vlgmr.msra.gmra.mxu0 %v1703_v27  ;;  %941 = vmatmul.mubr.bf16.vlgmr.msra.gmra.mxu1 %v1704_v28 }
 0x1b9   : > { %916 = vmatprep.mubr.bf16.mxu0 %v686_v29  ;;  %948 = vmatprep.mubr.bf16.mxu1 %v690_v30 }
 0x1c0   : > { %917 = vmatmul.mubr.bf16.gmra.mxu0 %v1705_v35  ;;  %949 = vmatmul.mubr.bf16.gmra.mxu1 %v1706_v36 }
 0x1c1   : > { %924 = vmatprep.mubr.bf16.mxu0 %v687_v37  ;;  %956 = vmatprep.mubr.bf16.mxu1 %v691_v38 }
 0x1c8   : > { %925 = vmatmul.mubr.bf16.gmra.mxu0 %v1707_v43  ;;  %957 = vmatmul.mubr.bf16.gmra.mxu1 %v1708_v44 }
 0x1c9   : > { %932 = vmatprep.mubr.bf16.mxu0 %v688_v45  ;;  %964 = vmatprep.mubr.bf16.mxu1 %v692_v46 }
 0x1d0   : > { %933 = vmatmul.mubr.bf16.gmra.mxu0 %v1709_v47  ;;  %965 = vmatmul.mubr.bf16.gmra.mxu1 %v1710_v48 }
 0x278   : > { %v1405_v49 = vpop.f32.mrf.mxu0  ;;  %v1429_v50 = vpop.f32.mrf.mxu1 }
 0x27a   : > { %v1406_v51 = vpop.f32.mrf.mxu0  ;;  %v1430_v52 = vpop.f32.mrf.mxu1 }
 0x27b   : > { %v1407_v54 = vadd.f32 %v1406_v51, %v1405_v49  ;;  %v1431_v55 = vadd.f32 %v1430_v52, %v1429_v50 }
 0x27c   : > { %v1408_v56 = vpop.f32.mrf.mxu0  ;;  %v1432_v57 = vpop.f32.mrf.mxu1 }
 0x27d   : > { %v911_v58 = vadd.f32 %v1407_v54, %v2327_v53  ;;  %v943_v59 = vadd.f32 %v1431_v55, %v2327_v53 }
 0x27e   : > { %v1409_v60 = vpop.f32.mrf.mxu0  ;;  %v1433_v61 = vpop.f32.mrf.mxu1 }
 0x27f   : > { %v1410_v62 = vadd.f32 %v1409_v60, %v1408_v56  ;;  %v1434_v63 = vadd.f32 %v1433_v61, %v1432_v57  ;;  %v973_v4 = vmax.f32 %v911_v58, 0.0  ;;  %v981_v5 = vmax.f32 %v943_v59, 0.0 }
 0x280   : > { %v1411_v0 = vpop.f32.mrf.mxu0  ;;  %v1435_v1 = vpop.f32.mrf.mxu1 }
 0x281   : > { %v914_v2 = vadd.f32 %v1410_v62, %v2327_v53  ;;  %v946_v3 = vadd.f32 %v1434_v63, %v2327_v53 }
 0x282   : > { %v1412_v6 = vpop.f32.mrf.mxu0  ;;  %v1436_v7 = vpop.f32.mrf.mxu1 }
 0x283   : > { %v974_v8 = vmax.f32 %v914_v2, 0.0  ;;  %v982_v9 = vmax.f32 %v946_v3, 0.0  ;;  %v1413_v10 = vadd.f32 %v1412_v6, %v1411_v0  ;;  %v1437_v11 = vadd.f32 %v1436_v7, %v1435_v1 }
 0x284   : > { %v1414_v12 = vpop.f32.mrf.mxu0  ;;  %v1438_v13 = vpop.f32.mrf.mxu1 }
 0x285   : > { %v1329_v14 = vpack.c.bf16 %v974_v8, %v973_v4  ;;  %v1349_v15 = vpack.c.bf16 %v982_v9, %v981_v5  ;;  %v919_v16 = vadd.f32 %v1413_v10, %v2327_v53  ;;  %v951_v17 = vadd.f32 %v1437_v11, %v2327_v53 }
 0x286   : > { %v1415_v18 = vpop.f32.mrf.mxu0  ;;  %v1439_v19 = vpop.f32.mrf.mxu1 }
 0x287   : > { %1330 = vst [vmem:[%s2296_s5] sm:$0xff] %v1329_v14   ;;  %1369 = vst [vmem:[%s2296_s5 + $0x20] sm:$0xff] %v1349_v15   ;;  %v1416_v20 = vadd.f32 %v1415_v18, %v1414_v12  ;;  %v1440_v21 = vadd.f32 %v1439_v19, %v1438_v13  ;;  %v975_v26 = vmax.f32 %v919_v16, 0.0  ;;  %v983_v27 = vmax.f32 %v951_v17, 0.0 }
 0x288   : > { %v1417_v22 = vpop.f32.mrf.mxu0  ;;  %v1441_v23 = vpop.f32.mrf.mxu1 }
 0x289   : > { %v922_v24 = vadd.f32 %v1416_v20, %v2327_v53  ;;  %v954_v25 = vadd.f32 %v1440_v21, %v2327_v53 }
 0x28a   : > { %v1418_v28 = vpop.f32.mrf.mxu0  ;;  %v1442_v29 = vpop.f32.mrf.mxu1 }
 0x28b   : > { %v976_v30 = vmax.f32 %v922_v24, 0.0  ;;  %v984_v31 = vmax.f32 %v954_v25, 0.0  ;;  %v1419_v32 = vadd.f32 %v1418_v28, %v1417_v22  ;;  %v1443_v33 = vadd.f32 %v1442_v29, %v1441_v23 }
 0x28c   : > { %v1420_v34 = vpop.f32.mrf.mxu0  ;;  %v1444_v35 = vpop.f32.mrf.mxu1 }
 0x28d   : > { %v1334_v36 = vpack.c.bf16 %v976_v30, %v975_v26  ;;  %v1354_v37 = vpack.c.bf16 %v984_v31, %v983_v27  ;;  %v927_v38 = vadd.f32 %v1419_v32, %v2327_v53  ;;  %v959_v39 = vadd.f32 %v1443_v33, %v2327_v53 }
 0x28e   : > { %v1421_v40 = vpop.f32.mrf.mxu0  ;;  %v1445_v41 = vpop.f32.mrf.mxu1 }
 0x28f   : > { %1366 = vst [vmem:[%s2296_s5 + $0x8] sm:$0xff] %v1334_v36   ;;  %1370 = vst [vmem:[%s2296_s5 + $0x28] sm:$0xff] %v1354_v37   ;;  %v1422_v42 = vadd.f32 %v1421_v40, %v1420_v34  ;;  %v1446_v43 = vadd.f32 %v1445_v41, %v1444_v35  ;;  %v977_v48 = vmax.f32 %v927_v38, 0.0  ;;  %v985_v49 = vmax.f32 %v959_v39, 0.0 }
 0x290   : > { %v1423_v44 = vpop.f32.mrf.mxu0  ;;  %v1447_v45 = vpop.f32.mrf.mxu1 }
 0x291   : > { %v930_v46 = vadd.f32 %v1422_v42, %v2327_v53  ;;  %v962_v47 = vadd.f32 %v1446_v43, %v2327_v53 }
 0x292   : > { %v1424_v50 = vpop.f32.mrf.mxu0  ;;  %v1448_v51 = vpop.f32.mrf.mxu1 }
 0x293   : > { %v978_v52 = vmax.f32 %v930_v46, 0.0  ;;  %v986_v54 = vmax.f32 %v962_v47, 0.0  ;;  %v1425_v55 = vadd.f32 %v1424_v50, %v1423_v44  ;;  %v1449_v56 = vadd.f32 %v1448_v51, %v1447_v45 }
 0x294   : > { %v1426_v57 = vpop.f32.mrf.mxu0  ;;  %v1450_v58 = vpop.f32.mrf.mxu1 }
 0x295   : > { %v1339_v59 = vpack.c.bf16 %v978_v52, %v977_v48  ;;  %v1359_v60 = vpack.c.bf16 %v986_v54, %v985_v49  ;;  %v935_v63 = vadd.f32 %v1425_v55, %v2327_v53  ;;  %v967_v0 = vadd.f32 %v1449_v56, %v2327_v53 }
 0x296   : > { %v1427_v61 = vpop.f32.mrf.mxu0  ;;  %v1451_v62 = vpop.f32.mrf.mxu1 }
 0x297   : > { %1367 = vst [vmem:[%s2296_s5 + $0x10] sm:$0xff] %v1339_v59   ;;  %1371 = vst [vmem:[%s2296_s5 + $0x30] sm:$0xff] %v1359_v60   ;;  %v1428_v1 = vadd.f32 %v1427_v61, %v1426_v57  ;;  %v1452_v2 = vadd.f32 %v1451_v62, %v1450_v58  ;;  %v979_v5 = vmax.f32 %v935_v63, 0.0  ;;  %v987_v6 = vmax.f32 %v967_v0, 0.0 }
 0x299   : > { %v938_v3 = vadd.f32 %v1428_v1, %v2327_v53  ;;  %v970_v4 = vadd.f32 %v1452_v2, %v2327_v53 }
 0x29b   : > { %v980_v7 = vmax.f32 %v938_v3, 0.0  ;;  %v988_v8 = vmax.f32 %v970_v4, 0.0 }
 0x29d   : > { %v1344_v9 = vpack.c.bf16 %v980_v7, %v979_v5  ;;  %v1364_v10 = vpack.c.bf16 %v988_v8, %v987_v6 }
 0x29f   : > { %1368 = vst [vmem:[%s2296_s5 + $0x18] sm:$0xff] %v1344_v9   ;;  %1372 = vst [vmem:[%s2296_s5 + $0x38] sm:$0xff] %v1364_v10  }
 0x2a0 PF: > { %s2503_s17 = sld [smem:[#allocation19_spill]]  ;;  %s1083_s16 = sshll.u32 %s2296_s5, 4  ;;  %s2360_s16 = int_to_ptr.vmem [resolvable:$true] %s1083_s16 }
 0x2a1   : > { %s2504_s3 = sld [smem:[#allocation29_spill]]  ;;  %s2364_s10 = scalar_lea.sflag [#allocation5], %s308_s27 }
 0x2a2   : > { %s1821_s8 = scalar_lea.vmem %s2360_s16, 1024  ;;  %p2505_p2 = scmp.ne.s32.totalorder %s2492_s7, 0 }
 0x2a3   : > { %p1822_p1 = scmp.ne.s32.totalorder %s2360_s16, %s1821_s8  ;;  %s1987_s4 = smov [#allocation11]  }
 0x2a4   : > { %s1825_s11 = sshll.u32 %s1987_s4, 4  ;;  %s1826_s11 = int_to_ptr.vmem [resolvable:$false] %s1825_s11 }
 0x2a5   : > { %p1823_p9 = pnand %p1822_p1, %p2505_p2  ;;  %s1827_s24 = scalar_lea.vmem %s1826_s11, 2048 }
 0x2a6   : > { %s1325_s23 = sshll.u32 %s2503_s17, 10  ;;  %p1828_p8 = scmp.lt.s32.totalorder %s2360_s16, %s1826_s11 }
 0x2a7   : > { %s2357_s14 = scalar_lea.hbm %s2504_s3, %s1325_s23  ;;  %p1824_p7 = pneg %p1823_p9 }
 0x2a8   : > { %p1829_p10 = scmp.lt.s32.totalorder %s1827_s24, %s1821_s8 }
 0x2aa   : > { %p1830_p3 = por %p1829_p10, %p1828_p8 }
 0x2ac   : > { %p1831_p5 = pnand %p1830_p3, %p1824_p7 }
 0x2ae   : > { %1834 = shalt.err (!%p1831_p5)
}
 0x2af   : > { %s1835_s27 = scalar_lea.hbm %s2357_s14, 1024  ;;  %s1839_s1 = scalar_lea.hbm %s2504_s3, 3072 }
 0x2b0   : > { %p1836_p0 = scmp.ne.s32.totalorder %s2357_s14, %s1835_s27  ;;  %p1840_p13 = scmp.lt.s32.totalorder %s2357_s14, %s2504_s3 }
 0x2b1   : > { %p1841_p6 = scmp.lt.s32.totalorder %s1839_s1, %s1835_s27 }
 0x2b2   : > { %p1837_p12 = pnand %p1836_p0, %p2505_p2 }
 0x2b3   : > { %p1842_p11 = por %p1841_p6, %p1840_p13 }
 0x2b4   : > { %p1838_p4 = pneg %p1837_p12 }
 0x2b6   : > { %p1843_p1 = pnand %p1842_p11, %p1838_p4 }
 0x2b8   : > { %1846 = shalt.err (!%p1843_p1)
}
 0x2b9   : > { %s1988_s17 = smov 64   ;;  %s1989_s23 = smov 4  }
 0x2ba   : > { %1528 = dma.vmem_to_hbm [thread:$0]  (%p2505_p2), %s2360_s16, 1024, %s2357_s14, %s2364_s10, %s1988_s17, %s1988_s17, %s1989_s23  }
 0x2bb PF: > { %p1551_p9 = scmp.ge.s32.totalorder %s1977_s6, 2  ;;  %s1098_s30 = sand.u32 1, %s1925_s18  }
 0x2bc   : > { %p2506_p7 = scmp.ne.s32.totalorder %s2493_s13, 0  ;;  %s1099_s0 = scalar_lea.sflag [#allocation5], %s1098_s30 }
 0x2be   : > { %p1545_p8 = pnand %p1551_p9, %p2506_p7 }
 0x2c0   : > { %p1546_p10 = pneg %p1545_p8 }
 0x2c2   : > { %1920 = dma.done.wait (%p1546_p10), %s1099_s0, 1024  }
 0x2c3   : > { %1922 = vsyncadd (%p1546_p10), %s1099_s0, 4294966272  ;;  %s25_s6 = sadd.s32 1, %s1977_s6   ;;  %s2508_s7 = sld [smem:[#allocation17_spill]] }
 0x2c4   : > { %p2392_p3 = scmp.ge.s32.totalorder %s25_s6, 11   ;;  %s2509_s23 = sld [smem:[#allocation23_spill]] }
 0x2c5   : > { %s2510_s13 = sld [smem:[#allocation20_spill]]  ;;  %s2513_s18 = smov %s1929_s19 }
 0x2c6   : > { %s2511_s14 = sld [smem:[#allocation21_spill]]  ;;  %s2514_s19 = smov %s1933_s20 }
 0x2c7   : > { %s2512_s30 = sld [smem:[#allocation22_spill]]  ;;  %s2515_s20 = smov %s2223_s9 }
 0x2c8   : > { %s2516_s21 = smov %s1941_s22  ;;  %s2518_s24 = smov %s1953_s25 }
 0x2c9   : > { %s2517_s22 = smov %s2508_s7  ;;  %s2519_s25 = smov %s1957_s26 }
 0x2ca   : > { %s2520_s26 = smov %s2185_s28  ;;  %s2521_s27 = smov %s1969_s29 }
 0x2cb   : > { %s2522_s28 = smov %s2510_s13  ;;  %24 = sbr.rel (!%p2392_p3) target bundleno = 19 (0x13), region = 121 }
 0x2cc   : > { %s2523_s29 = smov %s2511_s14 }
 0x2d0   :  { %1104 = vsyncpa [#allocation4], 1 }
 0x2d1   :  { %1106 = vsyncpa [#allocation4 + $0x1], 1 }
 0x2d2   :  { %1107 = vsyncpa [#allocation7], 1 }
 0x2d3   :  { %1109 = vsyncpa [#allocation7 + $0x1], 1 }
 0x2d4   :  { %1110 = vsyncpa [#allocation10], 1 }
 0x2d5   :  { %1111 = vsyncpa [#allocation5], 1 }
 0x2d6   :  { %1113 = vsyncpa [#allocation5 + $0x1], 1 }

</bundles_post_ra>
